<compile_context>
chip_gen: v6e
topology: v6e:2x2x1
jax: 0.10.0
libtpu: 0.0.40
codegen_flags: <defaults>
</compile_context>

<pallas_src>
import functools

import jax
import jax.numpy as jnp
from jax import lax
from jax.experimental import pallas as pl
from jax.experimental.pallas import tpu as pltpu

_NEG_LARGE = -1e30  # finite "-inf": exp() underflows to 0.0 in f32, never NaN


def _mil_kernel(bag_ref,
                w1_ref, b1_ref, w2_ref, b2_ref,
                wa1_ref, ba1_ref, wa2_ref, ba2_ref,
                m_ref, l_ref, acc_ref,
                *, tile_n, tiles_per_split, n_valid, n_pad, compute_dtype):
    s = pl.program_id(0)   # instance-range split ("parallel": v7x dual-TC)
    i = pl.program_id(1)   # tile within the split ("arbitrary": reduction)
    f32 = jnp.float32

    # ---- init this split's running-softmax state (kept in its output block) ----
    @pl.when(i == 0)
    def _init():
        m_ref[...] = jnp.full(m_ref.shape, _NEG_LARGE, f32)
        l_ref[...] = jnp.zeros(l_ref.shape, f32)
        acc_ref[...] = jnp.zeros(acc_ref.shape, f32)

    # ---- feature extractor; weights arrive pre-cast to compute_dtype ----
    x = bag_ref[...].astype(compute_dtype)                                # (TN, D)
    h = jnp.dot(x, w1_ref[...], preferred_element_type=f32) + b1_ref[...]
    h = jnp.maximum(h, 0.0)
    h = jnp.dot(h.astype(compute_dtype), w2_ref[...],
                preferred_element_type=f32) + b2_ref[...]
    h = jnp.maximum(h, 0.0)                                               # (TN, H) f32

    # ---- attention logits, lane-dense (1, TN); softmax math stays in f32 ----
    a = jnp.tanh(jnp.dot(h.astype(compute_dtype), wa1_ref[...],
                         preferred_element_type=f32) + ba1_ref[...])      # (TN, H) f32
    # (1, H) x (TN, H)^T -> (1, TN): MXU "NT" matmul against the head row.
    logits = lax.dot_general(wa2_ref[...], a, (((1,), (1,)), ((), ())),
                             preferred_element_type=f32) + ba2_ref[...]   # (1, TN)

    # Mask padded tail rows; skipped entirely at trace time when there is no
    # padding.  With the lane-dense layout this is only ~TN/128 vreg ops.
    if n_pad != n_valid:
        row = (lax.broadcasted_iota(jnp.int32, (1, tile_n), 1)
               + (s * tiles_per_split + i) * tile_n)
        logits = jnp.where(row < n_valid, logits, _NEG_LARGE)

    # ---- flash-style online softmax + MXU pooling over the instance axis ----
    m_prev = m_ref[...]                                                   # (1, 1)
    m_new = jnp.maximum(m_prev, jnp.max(logits, axis=-1, keepdims=True))
    corr = jnp.exp(m_prev - m_new)                                        # (1, 1)
    p = jnp.exp(logits - m_new)                                           # (1, TN)
    l_ref[...] = l_ref[...] * corr + jnp.sum(p, axis=-1, keepdims=True)
    acc_ref[...] = acc_ref[...] * corr + jnp.dot(p, h,
                                                 preferred_element_type=f32)
    m_ref[...] = m_new


def _round_up(x, m):
    return ((x + m - 1) // m) * m


def deep_attention_mil(bag, params, *, tile_n=1024, num_splits=2,
                       compute_dtype=jnp.bfloat16,
                       vmem_budget_bytes=24 * 1024 * 1024):
    """bag: (N, instance_dim) f32. params: dict of (in_dim, out_dim) weights."""
    n, d = bag.shape
    h_dim = params["w1"].shape[1]
    f32 = jnp.float32
    assert num_splits >= 1

    # ---- derive tile_n from a VMEM budget safe on v5e / v6e / v7x (64 MiB) ----
    iw = jnp.dtype(compute_dtype).itemsize
    # Constant-index weight inputs are still double-buffered by the pipeline
    # (fine at H=128; for very large H/D consider pipeline_mode=pl.Buffered(1)).
    weight_vmem = 2 * (iw * (d * h_dim + 2 * h_dim * h_dim) + 4 * (4 * h_dim + 2))
    per_row = (2 * 4 * d              # bag tile, f32, double-buffered
               + iw * d               # in-kernel compute-dtype copy of the bag
               + 12 * h_dim           # h, a (f32) + matmul temporaries
               + 2 * iw * h_dim)      # compute-dtype casts of h feeding the MXU
    tile_cap = max(8, (vmem_budget_bytes - weight_vmem) // per_row)
    tile_n = min(int(tile_n), int(tile_cap), _round_up(pl.cdiv(n, num_splits), 8))
    tile_n = max(8, (tile_n // 8) * 8)

    tiles_per_split = pl.cdiv(pl.cdiv(n, tile_n), num_splits)
    n_pad = num_splits * tiles_per_split * tile_n
    if n_pad != n:
        bag = jnp.pad(bag, ((0, n_pad - n), (0, 0)))
    grid = (num_splits, tiles_per_split)

    # ---- one-time wrapper-side casts (weights are grid-invariant) ----
    cdt = compute_dtype
    w1 = params["w1"].astype(cdt)
    w2 = params["w2"].astype(cdt)
    wa1 = params["wa1"].astype(cdt)
    b1 = params["b1"].astype(f32)
    b2 = params["b2"].astype(f32)
    ba1 = params["ba1"].astype(f32)
    wa2_row = params["wa2"].reshape(1, h_dim).astype(f32)   # logits stay f32
    ba2 = params["ba2"].reshape(1, 1).astype(f32)

    def const(shape):
        return pl.BlockSpec(shape, lambda s, i: (0, 0))      # fetched once, VMEM-resident

    in_specs = [
        pl.BlockSpec((tile_n, d), lambda s, i: (s * tiles_per_split + i, 0)),
        const((d, h_dim)), const((1, h_dim)),                 # w1, b1
        const((h_dim, h_dim)), const((1, h_dim)),             # w2, b2
        const((h_dim, h_dim)), const((1, h_dim)),             # wa1, ba1
        const((1, h_dim)), const((1, 1)),                     # wa2 row, ba2
    ]
    # Per-split partial online-softmax state, accumulated directly in its own
    # output block (distinct blocks per split -> no cross-core write conflicts).
    out_shape = (jax.ShapeDtypeStruct((num_splits, 1, 1), f32),      # running max m
                 jax.ShapeDtypeStruct((num_splits, 1, 1), f32),      # running denom l
                 jax.ShapeDtypeStruct((num_splits, 1, h_dim), f32))  # weighted sum
    out_specs = (pl.BlockSpec((None, 1, 1), lambda s, i: (s, 0, 0)),
                 pl.BlockSpec((None, 1, 1), lambda s, i: (s, 0, 0)),
                 pl.BlockSpec((None, 1, h_dim), lambda s, i: (s, 0, 0)))

    kernel = functools.partial(_mil_kernel, tile_n=tile_n,
                               tiles_per_split=tiles_per_split,
                               n_valid=n, n_pad=n_pad, compute_dtype=cdt)

    flops = 2 * n_pad * h_dim * (d + 2 * h_dim + 2)
    bytes_accessed = (4 * int(bag.size)
                      + iw * (d * h_dim + 2 * h_dim * h_dim)
                      + 4 * (4 * h_dim + 2)
                      + 4 * num_splits * (h_dim + 2))
    cost = pl.CostEstimate(flops=int(flops),
                           transcendentals=int(n_pad * (h_dim + 1)),
                           bytes_accessed=int(bytes_accessed))

    vmem_limit = int(min(48 * 1024 * 1024,
                         max(32 * 1024 * 1024,
                             2 * (weight_vmem + per_row * tile_n))))

    m_part, l_part, acc_part = pl.pallas_call(
        kernel,
        out_shape=out_shape,
        grid_spec=pltpu.PrefetchScalarGridSpec(
            num_scalar_prefetch=0,
            grid=grid,
            in_specs=in_specs,
            out_specs=out_specs),
        compiler_params=pltpu.CompilerParams(
            dimension_semantics=("parallel", "arbitrary"),
            vmem_limit_bytes=vmem_limit),
        cost_estimate=cost,
    )(bag, w1, b1, w2, b2, wa1, ba1, wa2_row, ba2)

    # ---- tiny epilogue in plain JAX (per review): log-sum-exp combine of the
    # per-split partials + the (1, H) @ (H, C) classifier (< 1 KFLOP).  An
    # all-padding split has m = -1e30, so its scale underflows to exactly 0.
    hp = lax.Precision.HIGHEST
    m_s = m_part[:, 0, 0]                       # (S,)
    l_s = l_part[:, 0, 0]                       # (S,)
    acc_s = acc_part[:, 0, :]                   # (S, H)
    m_max = jnp.max(m_s)
    scale = jnp.exp(m_s - m_max)                # (S,)
    denom = jnp.sum(l_s * scale)
    rep = jnp.sum(acc_s * scale[:, None], axis=0, keepdims=True) / denom  # (1, H)
    return jnp.dot(rep, params["wc"], precision=hp,
                   preferred_element_type=f32) + params["bc"]             # (1, C)


def init_params(key, instance_dim, hidden_dim, num_classes):
    """Deterministic synthetic init; weights stored as (in_dim, out_dim)."""
    ks = jax.random.split(key, 5)

    def lin(k, din, dout):
        scale = 1.0 / jnp.sqrt(jnp.float32(din))
        w = jax.random.uniform(k, (din, dout), jnp.float32, -scale, scale)
        b = jnp.zeros((1, dout), jnp.float32)
        return w, b

    w1, b1 = lin(ks[0], instance_dim, hidden_dim)
    w2, b2 = lin(ks[1], hidden_dim, hidden_dim)
    wa1, ba1 = lin(ks[2], hidden_dim, hidden_dim)
    wa2, ba2 = lin(ks[3], hidden_dim, 1)
    wc, bc = lin(ks[4], hidden_dim, num_classes)
    return dict(w1=w1, b1=b1, w2=w2, b2=b2,
                wa1=wa1, ba1=ba1, wa2=wa2, ba2=ba2,
                wc=wc, bc=bc)


def reference_forward(bag, p, compute_dtype=jnp.float32):
    """Pure-JAX reference mirroring the PyTorch forward (optional bf16 matmuls)."""
    f32 = jnp.float32
    hp = lax.Precision.HIGHEST
    cdt = compute_dtype
    h = jnp.maximum(jnp.dot(bag.astype(cdt), p["w1"].astype(cdt),
                            preferred_element_type=f32, precision=hp) + p["b1"], 0.0)
    h = jnp.maximum(jnp.dot(h.astype(cdt), p["w2"].astype(cdt),
                            preferred_element_type=f32, precision=hp) + p["b2"], 0.0)
    a = jnp.tanh(jnp.dot(h.astype(cdt), p["wa1"].astype(cdt),
                         preferred_element_type=f32, precision=hp) + p["ba1"])
    logits = jnp.dot(a, p["wa2"], precision=hp, preferred_element_type=f32) + p["ba2"]
    attn = jax.nn.softmax(logits, axis=0)
    rep = jnp.sum(attn * h, axis=0, keepdims=True)
    return jnp.dot(rep, p["wc"], precision=hp, preferred_element_type=f32) + p["bc"]


if __name__ == "__main__":
    # N chosen as a non-multiple of the tile to exercise tail-row masking.
    N, INSTANCE_DIM, HIDDEN_DIM, NUM_CLASSES = 200, 64, 128, 4

    key = jax.random.PRNGKey(0)
    k_bag, k_params = jax.random.split(key)
    bag = jax.random.normal(k_bag, (N, INSTANCE_DIM), jnp.float32)
    params = init_params(k_params, INSTANCE_DIM, HIDDEN_DIM, NUM_CLASSES)

    ref_f32 = reference_forward(bag, params, jnp.float32)

    # f32, single split, small tile: exercises multi-tile reduction + tail mask.
    out_a = jax.block_until_ready(deep_attention_mil(
        bag, params, tile_n=128, num_splits=1, compute_dtype=jnp.float32))
    assert out_a.shape == (1, NUM_CLASSES)
    assert jnp.allclose(out_a, ref_f32, atol=1e-3, rtol=1e-3)

    # f32, two-way split (v7x dual-TensorCore layout): exercises the partial
    # online-softmax combine.
    out_b = jax.block_until_ready(deep_attention_mil(
        bag, params, num_splits=2, compute_dtype=jnp.float32))
    assert jnp.allclose(out_b, ref_f32, atol=1e-3, rtol=1e-3)

    # bf16 matmul inputs with f32 accumulation: the production fast path.
    ref_bf16 = reference_forward(bag, params, jnp.bfloat16)
    out_c = jax.block_until_ready(deep_attention_mil(
        bag, params, num_splits=2, compute_dtype=jnp.bfloat16))
    assert jnp.allclose(out_c, ref_bf16, atol=2e-3, rtol=2e-3)

    # Tiny bag where one split is entirely padding: the combine must zero it.
    bag_small = bag[:7]
    ref_small = reference_forward(bag_small, params, jnp.float32)
    out_d = jax.block_until_ready(deep_attention_mil(
        bag_small, params, num_splits=2, compute_dtype=jnp.float32))
    assert jnp.allclose(out_d, ref_small, atol=1e-3, rtol=1e-3)

    print("KERNEL_OK")
</pallas_src>

<mosaic_0001>
module attributes {stable_mosaic.version = 11 : i64} {
  func.func @_mil_kernel(%arg0: i32, %arg1: i32, %arg2: memref<128x64xf32, #tpu.memory_space<vmem>>, %arg3: memref<64x128xf32, #tpu.memory_space<vmem>>, %arg4: memref<1x128xf32, #tpu.memory_space<vmem>>, %arg5: memref<128x128xf32, #tpu.memory_space<vmem>>, %arg6: memref<1x128xf32, #tpu.memory_space<vmem>>, %arg7: memref<128x128xf32, #tpu.memory_space<vmem>>, %arg8: memref<1x128xf32, #tpu.memory_space<vmem>>, %arg9: memref<1x128xf32, #tpu.memory_space<vmem>>, %arg10: memref<1x1xf32, #tpu.memory_space<vmem>>, %arg11: memref<1x1x1xf32, #tpu.memory_space<vmem>>, %arg12: memref<1x1x1xf32, #tpu.memory_space<vmem>>, %arg13: memref<1x1x128xf32, #tpu.memory_space<vmem>>) attributes {dimension_semantics = [#tpu.dimension_semantics<parallel>, #tpu.dimension_semantics<arbitrary>], iteration_bounds = array<i64: 1, 2>, scalar_prefetch = 0 : i64, scratch_operands = 0 : i64, tpu.core_type = #tpu.core_type<tc>, window_params = [{transform_indices = @transform_0, window_bounds = array<i64: 128, 64>}, {pipeline_mode = #tpu.pipeline_mode<synchronous>, transform_indices = @transform_1, window_bounds = array<i64: 64, 128>}, {pipeline_mode = #tpu.pipeline_mode<synchronous>, transform_indices = @transform_2, window_bounds = array<i64: 1, 128>}, {pipeline_mode = #tpu.pipeline_mode<synchronous>, transform_indices = @transform_3, window_bounds = array<i64: 128, 128>}, {pipeline_mode = #tpu.pipeline_mode<synchronous>, transform_indices = @transform_4, window_bounds = array<i64: 1, 128>}, {pipeline_mode = #tpu.pipeline_mode<synchronous>, transform_indices = @transform_5, window_bounds = array<i64: 128, 128>}, {pipeline_mode = #tpu.pipeline_mode<synchronous>, transform_indices = @transform_6, window_bounds = array<i64: 1, 128>}, {pipeline_mode = #tpu.pipeline_mode<synchronous>, transform_indices = @transform_7, window_bounds = array<i64: 1, 128>}, {pipeline_mode = #tpu.pipeline_mode<synchronous>, transform_indices = @transform_8, window_bounds = array<i64: 1, 1>}, {transform_indices = @transform_9, window_bounds = array<i64: 1, 1, 1>}, {transform_indices = @transform_10, window_bounds = array<i64: 1, 1, 1>}, {transform_indices = @transform_11, window_bounds = array<i64: 1, 1, 128>}]} {
    %c0_i32 = arith.constant 0 : i32
    %0 = arith.cmpi eq, %arg1, %c0_i32 : i32
    %1 = arith.extui %0 : i1 to i32
    %c0_i32_0 = arith.constant 0 : i32
    %2 = arith.cmpi ne, %1, %c0_i32_0 : i32
    scf.if %2 {
      %cst_45 = arith.constant -1.000000e+30 : f32
      %70 = vector.broadcast %cst_45 : f32 to vector<1x1xf32>
      %c0_46 = arith.constant 0 : index
      %c0_47 = arith.constant 0 : index
      %c0_48 = arith.constant 0 : index
      %71 = vector.load %arg11[%c0_46, %c0_47, %c0_48] : memref<1x1x1xf32, #tpu.memory_space<vmem>>, vector<1x1x1xf32>
      %72 = vector.shape_cast %71 : vector<1x1x1xf32> to vector<1x1xf32>
      %73 = vector.shape_cast %70 : vector<1x1xf32> to vector<1x1x1xf32>
      tpu.vector_store %arg11[%c0_46, %c0_47, %c0_48], %73 {strides = array<i32>} : memref<1x1x1xf32, #tpu.memory_space<vmem>>, vector<1x1x1xf32>,
      %cst_49 = arith.constant 0.000000e+00 : f32
      %74 = vector.broadcast %cst_49 : f32 to vector<1x1xf32>
      %c0_50 = arith.constant 0 : index
      %c0_51 = arith.constant 0 : index
      %c0_52 = arith.constant 0 : index
      %75 = vector.load %arg12[%c0_50, %c0_51, %c0_52] : memref<1x1x1xf32, #tpu.memory_space<vmem>>, vector<1x1x1xf32>
      %76 = vector.shape_cast %75 : vector<1x1x1xf32> to vector<1x1xf32>
      %77 = vector.shape_cast %74 : vector<1x1xf32> to vector<1x1x1xf32>
      tpu.vector_store %arg12[%c0_50, %c0_51, %c0_52], %77 {strides = array<i32>} : memref<1x1x1xf32, #tpu.memory_space<vmem>>, vector<1x1x1xf32>,
      %cst_53 = arith.constant 0.000000e+00 : f32
      %78 = vector.broadcast %cst_53 : f32 to vector<1x128xf32>
      %c0_54 = arith.constant 0 : index
      %c0_55 = arith.constant 0 : index
      %c0_56 = arith.constant 0 : index
      %79 = vector.load %arg13[%c0_54, %c0_55, %c0_56] : memref<1x1x128xf32, #tpu.memory_space<vmem>>, vector<1x1x128xf32>
      %80 = vector.shape_cast %79 : vector<1x1x128xf32> to vector<1x128xf32>
      %81 = vector.shape_cast %78 : vector<1x128xf32> to vector<1x1x128xf32>
      tpu.vector_store %arg13[%c0_54, %c0_55, %c0_56], %81 {strides = array<i32>} : memref<1x1x128xf32, #tpu.memory_space<vmem>>, vector<1x1x128xf32>,
    } else {
    }
    %c0 = arith.constant 0 : index
    %c0_1 = arith.constant 0 : index
    %3 = vector.load %arg2[%c0, %c0_1] : memref<128x64xf32, #tpu.memory_space<vmem>>, vector<128x64xf32>
    %c0_2 = arith.constant 0 : index
    %c0_3 = arith.constant 0 : index
    %4 = vector.load %arg3[%c0_2, %c0_3] : memref<64x128xf32, #tpu.memory_space<vmem>>, vector<64x128xf32>
    %cst = arith.constant dense<0.000000e+00> : vector<128x128xf32>
    %5 = tpu.matmul %3, %4, %cst {dimension_numbers = #tpu.dot_dimension_numbers<[1], [0], [0], [1], [0, 0, 1, 1], [], []>} : vector<128x64xf32>, vector<64x128xf32>, vector<128x128xf32> -> vector<128x128xf32>
    %c0_4 = arith.constant 0 : index
    %c0_5 = arith.constant 0 : index
    %6 = vector.load %arg4[%c0_4, %c0_5] : memref<1x128xf32, #tpu.memory_space<vmem>>, vector<1x128xf32>
    %7 = vector.broadcast %6 : vector<1x128xf32> to vector<128x128xf32>
    %8 = arith.addf %5, %7 : vector<128x128xf32>
    %cst_6 = arith.constant 0.000000e+00 : f32
    %9 = vector.broadcast %cst_6 : f32 to vector<128x128xf32>
    %10 = arith.maximumf %8, %9 : vector<128x128xf32>
    %c0_7 = arith.constant 0 : index
    %c0_8 = arith.constant 0 : index
    %11 = vector.load %arg5[%c0_7, %c0_8] : memref<128x128xf32, #tpu.memory_space<vmem>>, vector<128x128xf32>
    %cst_9 = arith.constant dense<0.000000e+00> : vector<128x128xf32>
    %12 = tpu.matmul %10, %11, %cst_9 {dimension_numbers = #tpu.dot_dimension_numbers<[1], [0], [0], [1], [0, 0, 1, 1], [], []>} : vector<128x128xf32>, vector<128x128xf32>, vector<128x128xf32> -> vector<128x128xf32>
    %c0_10 = arith.constant 0 : index
    %c0_11 = arith.constant 0 : index
    %13 = vector.load %arg6[%c0_10, %c0_11] : memref<1x128xf32, #tpu.memory_space<vmem>>, vector<1x128xf32>
    %14 = vector.broadcast %13 : vector<1x128xf32> to vector<128x128xf32>
    %15 = arith.addf %12, %14 : vector<128x128xf32>
    %cst_12 = arith.constant 0.000000e+00 : f32
    %16 = vector.broadcast %cst_12 : f32 to vector<128x128xf32>
    %17 = arith.maximumf %15, %16 : vector<128x128xf32>
    %c0_13 = arith.constant 0 : index
    %c0_14 = arith.constant 0 : index
    %18 = vector.load %arg7[%c0_13, %c0_14] : memref<128x128xf32, #tpu.memory_space<vmem>>, vector<128x128xf32>
    %cst_15 = arith.constant dense<0.000000e+00> : vector<128x128xf32>
    %19 = tpu.matmul %17, %18, %cst_15 {dimension_numbers = #tpu.dot_dimension_numbers<[1], [0], [0], [1], [0, 0, 1, 1], [], []>} : vector<128x128xf32>, vector<128x128xf32>, vector<128x128xf32> -> vector<128x128xf32>
    %c0_16 = arith.constant 0 : index
    %c0_17 = arith.constant 0 : index
    %20 = vector.load %arg8[%c0_16, %c0_17] : memref<1x128xf32, #tpu.memory_space<vmem>>, vector<1x128xf32>
    %21 = vector.broadcast %20 : vector<1x128xf32> to vector<128x128xf32>
    %22 = arith.addf %19, %21 : vector<128x128xf32>
    %23 = math.tanh %22 : vector<128x128xf32>
    %c0_18 = arith.constant 0 : index
    %c0_19 = arith.constant 0 : index
    %24 = vector.load %arg9[%c0_18, %c0_19] : memref<1x128xf32, #tpu.memory_space<vmem>>, vector<1x128xf32>
    %cst_20 = arith.constant dense<0.000000e+00> : vector<1x128xf32>
    %25 = tpu.matmul %24, %23, %cst_20 {dimension_numbers = #tpu.dot_dimension_numbers<[1], [1], [0], [0], [0, 0, 1, 0], [], []>} : vector<1x128xf32>, vector<128x128xf32>, vector<1x128xf32> -> vector<1x128xf32>
    %c0_21 = arith.constant 0 : index
    %c0_22 = arith.constant 0 : index
    %26 = vector.load %arg10[%c0_21, %c0_22] : memref<1x1xf32, #tpu.memory_space<vmem>>, vector<1x1xf32>
    %27 = vector.broadcast %26 : vector<1x1xf32> to vector<1x128xf32>
    %28 = arith.addf %25, %27 : vector<1x128xf32>
    %29 = tpu.iota {dimensions = array<i32: 1>} : vector<1x128xi32>
    %c2_i32 = arith.constant 2 : i32
    %30 = arith.muli %arg0, %c2_i32 : i32
    %31 = arith.addi %30, %arg1 : i32
    %c128_i32 = arith.constant 128 : i32
    %32 = arith.muli %31, %c128_i32 : i32
    %33 = vector.broadcast %32 : i32 to vector<1x128xi32>
    %34 = arith.addi %29, %33 : vector<1x128xi32>
    %c200_i32 = arith.constant 200 : i32
    %35 = vector.broadcast %c200_i32 : i32 to vector<1x128xi32>
    %36 = arith.cmpi slt, %34, %35 : vector<1x128xi32>
    %cst_23 = arith.constant -1.000000e+30 : f32
    %37 = vector.broadcast %cst_23 : f32 to vector<1x128xf32>
    %38 = arith.select %36, %28, %37 : vector<1x128xi1>, vector<1x128xf32>
    %c0_24 = arith.constant 0 : index
    %c0_25 = arith.constant 0 : index
    %c0_26 = arith.constant 0 : index
    %39 = vector.load %arg11[%c0_24, %c0_25, %c0_26] : memref<1x1x1xf32, #tpu.memory_space<vmem>>, vector<1x1x1xf32>
    %40 = vector.shape_cast %39 : vector<1x1x1xf32> to vector<1x1xf32>
    %cst_27 = arith.constant dense<0xFF800000> : vector<1xf32>
    %41 = vector.multi_reduction <maximumf>, %38, %cst_27 [1] : vector<1x128xf32> to vector<1xf32>
    %42 = vector.shape_cast %41 : vector<1xf32> to vector<1x1xf32>
    %43 = arith.maximumf %40, %42 : vector<1x1xf32>
    %44 = arith.subf %40, %43 : vector<1x1xf32>
    %45 = math.exp %44 : vector<1x1xf32>
    %46 = vector.broadcast %43 : vector<1x1xf32> to vector<1x128xf32>
    %47 = arith.subf %38, %46 : vector<1x128xf32>
    %48 = math.exp %47 : vector<1x128xf32>
    %c0_28 = arith.constant 0 : index
    %c0_29 = arith.constant 0 : index
    %c0_30 = arith.constant 0 : index
    %49 = vector.load %arg12[%c0_28, %c0_29, %c0_30] : memref<1x1x1xf32, #tpu.memory_space<vmem>>, vector<1x1x1xf32>
    %50 = vector.shape_cast %49 : vector<1x1x1xf32> to vector<1x1xf32>
    %51 = arith.mulf %50, %45 : vector<1x1xf32>
    %cst_31 = arith.constant dense<0.000000e+00> : vector<1xf32>
    %52 = vector.multi_reduction <add>, %48, %cst_31 [1] : vector<1x128xf32> to vector<1xf32>
    %53 = vector.shape_cast %52 : vector<1xf32> to vector<1x1xf32>
    %54 = arith.addf %51, %53 : vector<1x1xf32>
    %c0_32 = arith.constant 0 : index
    %c0_33 = arith.constant 0 : index
    %c0_34 = arith.constant 0 : index
    %55 = vector.load %arg12[%c0_32, %c0_33, %c0_34] : memref<1x1x1xf32, #tpu.memory_space<vmem>>, vector<1x1x1xf32>
    %56 = vector.shape_cast %55 : vector<1x1x1xf32> to vector<1x1xf32>
    %57 = vector.shape_cast %54 : vector<1x1xf32> to vector<1x1x1xf32>
    tpu.vector_store %arg12[%c0_32, %c0_33, %c0_34], %57 {strides = array<i32>} : memref<1x1x1xf32, #tpu.memory_space<vmem>>, vector<1x1x1xf32>,
    %c0_35 = arith.constant 0 : index
    %c0_36 = arith.constant 0 : index
    %c0_37 = arith.constant 0 : index
    %58 = vector.load %arg13[%c0_35, %c0_36, %c0_37] : memref<1x1x128xf32, #tpu.memory_space<vmem>>, vector<1x1x128xf32>
    %59 = vector.shape_cast %58 : vector<1x1x128xf32> to vector<1x128xf32>
    %60 = vector.broadcast %45 : vector<1x1xf32> to vector<1x128xf32>
    %61 = arith.mulf %59, %60 : vector<1x128xf32>
    %cst_38 = arith.constant dense<0.000000e+00> : vector<1x128xf32>
    %62 = tpu.matmul %48, %17, %cst_38 {dimension_numbers = #tpu.dot_dimension_numbers<[1], [0], [0], [1], [0, 0, 1, 1], [], []>} : vector<1x128xf32>, vector<128x128xf32>, vector<1x128xf32> -> vector<1x128xf32>
    %63 = arith.addf %61, %62 : vector<1x128xf32>
    %c0_39 = arith.constant 0 : index
    %c0_40 = arith.constant 0 : index
    %c0_41 = arith.constant 0 : index
    %64 = vector.load %arg13[%c0_39, %c0_40, %c0_41] : memref<1x1x128xf32, #tpu.memory_space<vmem>>, vector<1x1x128xf32>
    %65 = vector.shape_cast %64 : vector<1x1x128xf32> to vector<1x128xf32>
    %66 = vector.shape_cast %63 : vector<1x128xf32> to vector<1x1x128xf32>
    tpu.vector_store %arg13[%c0_39, %c0_40, %c0_41], %66 {strides = array<i32>} : memref<1x1x128xf32, #tpu.memory_space<vmem>>, vector<1x1x128xf32>,
    %c0_42 = arith.constant 0 : index
    %c0_43 = arith.constant 0 : index
    %c0_44 = arith.constant 0 : index
    %67 = vector.load %arg11[%c0_42, %c0_43, %c0_44] : memref<1x1x1xf32, #tpu.memory_space<vmem>>, vector<1x1x1xf32>
    %68 = vector.shape_cast %67 : vector<1x1x1xf32> to vector<1x1xf32>
    %69 = vector.shape_cast %43 : vector<1x1xf32> to vector<1x1x1xf32>
    tpu.vector_store %arg11[%c0_42, %c0_43, %c0_44], %69 {strides = array<i32>} : memref<1x1x1xf32, #tpu.memory_space<vmem>>, vector<1x1x1xf32>,
    return
  }
  func.func @transform_0(%arg0: i32, %arg1: i32) -> (i32, i32) {
    %c2_i32 = arith.constant 2 : i32
    %0 = arith.muli %arg0, %c2_i32 : i32
    %1 = arith.addi %0, %arg1 : i32
    %c0_i32 = arith.constant 0 : i32
    %c0_i32_0 = arith.constant 0 : i32
    return %1, %c0_i32 : i32, i32
  }
  func.func @transform_1(%arg0: i32, %arg1: i32) -> (i32, i32) {
    %c0_i32 = arith.constant 0 : i32
    %c0_i32_0 = arith.constant 0 : i32
    %c0_i32_1 = arith.constant 0 : i32
    return %c0_i32, %c0_i32_0 : i32, i32
  }
  func.func @transform_2(%arg0: i32, %arg1: i32) -> (i32, i32) {
    %c0_i32 = arith.constant 0 : i32
    %c0_i32_0 = arith.constant 0 : i32
    %c0_i32_1 = arith.constant 0 : i32
    return %c0_i32, %c0_i32_0 : i32, i32
  }
  func.func @transform_3(%arg0: i32, %arg1: i32) -> (i32, i32) {
    %c0_i32 = arith.constant 0 : i32
    %c0_i32_0 = arith.constant 0 : i32
    %c0_i32_1 = arith.constant 0 : i32
    return %c0_i32, %c0_i32_0 : i32, i32
  }
  func.func @transform_4(%arg0: i32, %arg1: i32) -> (i32, i32) {
    %c0_i32 = arith.constant 0 : i32
    %c0_i32_0 = arith.constant 0 : i32
    %c0_i32_1 = arith.constant 0 : i32
    return %c0_i32, %c0_i32_0 : i32, i32
  }
  func.func @transform_5(%arg0: i32, %arg1: i32) -> (i32, i32) {
    %c0_i32 = arith.constant 0 : i32
    %c0_i32_0 = arith.constant 0 : i32
    %c0_i32_1 = arith.constant 0 : i32
    return %c0_i32, %c0_i32_0 : i32, i32
  }
  func.func @transform_6(%arg0: i32, %arg1: i32) -> (i32, i32) {
    %c0_i32 = arith.constant 0 : i32
    %c0_i32_0 = arith.constant 0 : i32
    %c0_i32_1 = arith.constant 0 : i32
    return %c0_i32, %c0_i32_0 : i32, i32
  }
  func.func @transform_7(%arg0: i32, %arg1: i32) -> (i32, i32) {
    %c0_i32 = arith.constant 0 : i32
    %c0_i32_0 = arith.constant 0 : i32
    %c0_i32_1 = arith.constant 0 : i32
    return %c0_i32, %c0_i32_0 : i32, i32
  }
  func.func @transform_8(%arg0: i32, %arg1: i32) -> (i32, i32) {
    %c0_i32 = arith.constant 0 : i32
    %c0_i32_0 = arith.constant 0 : i32
    %c0_i32_1 = arith.constant 0 : i32
    return %c0_i32, %c0_i32_0 : i32, i32
  }
  func.func @transform_9(%arg0: i32, %arg1: i32) -> (i32, i32, i32) {
    %c0_i32 = arith.constant 0 : i32
    %c0_i32_0 = arith.constant 0 : i32
    %c0_i32_1 = arith.constant 0 : i32
    return %arg0, %c0_i32, %c0_i32_0 : i32, i32, i32
  }
  func.func @transform_10(%arg0: i32, %arg1: i32) -> (i32, i32, i32) {
    %c0_i32 = arith.constant 0 : i32
    %c0_i32_0 = arith.constant 0 : i32
    %c0_i32_1 = arith.constant 0 : i32
    return %arg0, %c0_i32, %c0_i32_0 : i32, i32, i32
  }
  func.func @transform_11(%arg0: i32, %arg1: i32) -> (i32, i32, i32) {
    %c0_i32 = arith.constant 0 : i32
    %c0_i32_0 = arith.constant 0 : i32
    %c0_i32_1 = arith.constant 0 : i32
    return %arg0, %c0_i32, %c0_i32_0 : i32, i32, i32
  }
}

</mosaic_0001>

<bundles_post_ra>
// kernel: tpu_custom_call.1
= control target key start
LH: loop header
LB: loop body
LE: loop exit
PB: predicated region body
PF: predicated region fallthrough
CT: control target
= control target key end

     0   :  { %s2331_s0 = inlined_call_operand.vmem [shape: f32[256,64], index: 0, kind: input, shape index: {}]   ;;  %s2332_s1 = inlined_call_operand.vmem [shape: f32[64,128], index: 1, kind: input, shape index: {}]   ;;  %s2333_s2 = inlined_call_operand.vmem [shape: f32[1,128], index: 2, kind: input, shape index: {}]   ;;  %s2334_s3 = inlined_call_operand.vmem [shape: f32[128,128], index: 3, kind: input, shape index: {}]   ;;  %s2335_s4 = inlined_call_operand.vmem [shape: f32[1,128], index: 4, kind: input, shape index: {}]   ;;  %s2336_s5 = inlined_call_operand.vmem [shape: f32[128,128], index: 5, kind: input, shape index: {}]   ;;  %s2337_s6 = inlined_call_operand.vmem [shape: f32[1,128], index: 6, kind: input, shape index: {}]   ;;  %s2338_s7 = inlined_call_operand.vmem [shape: f32[1,128], index: 7, kind: input, shape index: {}]   ;;  %s2339_s8 = inlined_call_operand.<no memory space> [shape: f32[1,1], index: 8, kind: input, shape index: {}]   ;;  %s2340_s9 = inlined_call_operand.hbm [shape: f32[1,1,1], index: 9, kind: output, shape index: {0}]   ;;  %s2341_s10 = inlined_call_operand.hbm [shape: f32[1,1,1], index: 10, kind: output, shape index: {1}]   ;;  %s2342_s11 = inlined_call_operand.hbm [shape: f32[1,1,128], index: 11, kind: output, shape index: {2}]  }
   0x1   :  { %v17_v0 = vstv %s2339_s8 }
   0x2   :  { %18 = vst [vmem:[#allocation2] sm:$0x1] %v17_v0 }
   0x3   :  { %19 = vsyncpa [#allocation4], 0 }
   0x4   :  { %20 = vsyncpa [#allocation6], 0  ;;  %s1986_s19 = smov 0   ;;  %s1988_s20 = smov 0  }
   0x5   :  { %s1990_s21 = smov 0  }
   0x6 LB: > { %s1344_s8 = sadd.s32 4294967295, %s1913_s21   ;;  %s35_s22 = sadd.s32 1, %s1909_s20  ;;  %s1913_s21 = sphi %s1990_s21, %s26_s21   ;;  %s1909_s20 = sphi %s1988_s20, %s2345_s20   ;;  %s1905_s19 = sphi %s1986_s19, %s2344_s19  }
   0x7   : > { %p36_p0 = scmp.ge.s32.totalorder %s35_s22, 2  ;;  %p1347_p1 = scmp.ge.s32.totalorder %s1913_s21, 1 }
   0x8   : > { %p367_p2 = scmp.lt.s32.totalorder %s1913_s21, 3 }
   0x9   : > { %s2347_s22 = smov (%p36_p0, %s35_s22), 0 }
   0xa   : > { %p368_p3 = pnand %p1347_p1, %p367_p2 }
   0xb   : > { %s1348_s23 = sshll.u32 (!%p368_p3), %s1905_s19, 4  ;;  %p1350_p5 = scmp.ne.s32.totalorder (!%p368_p3), %s1905_s19, 0 }
   0xc   : > { %371 = sbr.rel (%p368_p3) target bundleno = 1425 (0x591), region = 56  ;;  %p407_p4 = scmp.lt.s32.totalorder (!%p368_p3), %s1348_s23, 31 }
  0x11   : > { %s2349_s23 = smov (!%p407_p4, %s1348_s23), 31  ;;  %417 = sbr.rel (%p1350_p5) target bundleno = 25 (0x19), region = 60 }
  0x12   : > { %s1349_s24 = sshll.u32 %s2349_s23, 3 }
  0x13   : > { %s2011_s27 = scalar_lea.vmem %s2331_s0, %s1349_s24 }
  0x16   : > { %vm418_vm0 = vcmask 0   ;;  %v1915_v1 = vmov -1e+30   ;;  %v1916_v2 = vmov 0.0  }
  0x17   : > { %419 = vst.msk [vmem:[#allocation3] sm:$0x1] %vm418_vm0, %v1915_v1  ;;  %420 = vst.msk [vmem:[#allocation5] sm:$0x1] %vm418_vm0, %v1916_v2 }
  0x18   : > { %421 = vst [vmem:[#allocation7] sm:$0x1] %v1916_v2 }
  0x19 PF: > { %v445_v3 = vld [vmem:[%s2332_s1 + $0x38] sm:$0xff]  ;;  %v444_v4 = vld [vmem:[%s2332_s1 + $0x30] sm:$0xff]  ;;  %vm453_vm1 = vcmask 523264   ;;  %v443_v5 = vld [vmem:[%s2332_s1 + $0x28] sm:$0xff]  ;;  %vm1918_vm2 = vmmov 0   ;;  %s1370_s29 = sshll.u32 %s1905_s19, 7 }
  0x1a   : > { %1501 = vmatprep.subr.mxu0 %v445_v3  ;;  %v422_v6 = vld [vmem:[%s2011_s27] sm:$0xff]  ;;  %v441_v8 = vld [vmem:[%s2332_s1 + $0x18] sm:$0xff]  ;;  %v440_v9 = vld [vmem:[%s2332_s1 + $0x10] sm:$0xff]  ;;  %vm1122_vm4 = vcmask 1040384   ;;  %vm1148_vm5 = vcmask 0   ;;  %p2287_p6 = scmp.eq.s32.totalorder %s1344_s8, 1 }
  0x1b   : > { %1502 = vmatpush3.msra.mxu0 %v445_v3  ;;  %1517 = vmatprep.mubr.msk.f32.mxu0 %vm453_vm1, %v422_v6  ;;  %v442_v7 = vld [vmem:[%s2332_s1 + $0x20] sm:$0xff]  ;;  %v678_v10 = vld [vmem:[%s2334_s3 + $0x78] sm:$0xff]  ;;  %v677_v11 = vld [vmem:[%s2334_s3 + $0x70] sm:$0xff]  ;;  %s1920_s30 = smov [#allocation3]  }
  0x1c   : > { %1503 = vmatprep.subr.mxu0 %v444_v4  ;;  %1541 = vmatprep.subr.mxu1 %v678_v10  ;;  %v439_v12 = vld [vmem:[%s2332_s1 + $0x8] sm:$0xff]  ;;  %v438_v14 = vld [vmem:[%s2332_s1] sm:$0xff]  ;;  %v674_v17 = vld [vmem:[%s2334_s3 + $0x58] sm:$0xff]  ;;  %s1243_s12 = sshll.u32 %s1920_s30, 4  ;;  %s1244_s12 = int_to_ptr.vmem [resolvable:$true] %s1243_s12 }
  0x1d   : > { %1504 = vmatpush3.msra.mxu0 %v444_v4  ;;  %1542 = vmatpush3.msra.mxu1 %v678_v10  ;;  %v676_v13 = vld [vmem:[%s2334_s3 + $0x68] sm:$0xff]  ;;  %v675_v15 = vld [vmem:[%s2334_s3 + $0x60] sm:$0xff]  ;;  %v424_v18 = vld [vmem:[%s2011_s27 + $0x10] sm:$0xff]  ;;  %s1817_s13 = scalar_lea.vmem %s1244_s12, 32  ;;  %p1818_p10 = scmp.lt.s32.totalorder %s1244_s12, %s1244_s12 }
  0x1e   : > { %1505 = vmatprep.subr.mxu0 %v443_v5  ;;  %1543 = vmatprep.subr.mxu1 %v677_v11  ;;  %v423_v16 = vld [vmem:[%s2011_s27 + $0x8] sm:$0xff]  ;;  %v673_v19 = vld [vmem:[%s2334_s3 + $0x50] sm:$0xff]  ;;  %v425_v20 = vld [vmem:[%s2011_s27 + $0x18] sm:$0xff] }
  0x1f   : > { %1506 = vmatpush3.msra.mxu0 %v443_v5  ;;  %1544 = vmatpush3.msra.mxu1 %v677_v11  ;;  %v672_v21 = vld [vmem:[%s2334_s3 + $0x48] sm:$0xff]  ;;  %v426_v22 = vld [vmem:[%s2011_s27 + $0x20] sm:$0xff]  ;;  %v670_v25 = vld [vmem:[%s2334_s3 + $0x38] sm:$0xff] }
  0x20   : > { %1507 = vmatprep.subr.mxu0 %v442_v7  ;;  %1545 = vmatprep.subr.mxu1 %v676_v13  ;;  %v671_v23 = vld [vmem:[%s2334_s3 + $0x40] sm:$0xff]  ;;  %v427_v24 = vld [vmem:[%s2011_s27 + $0x28] sm:$0xff]  ;;  %v428_v26 = vld [vmem:[%s2011_s27 + $0x30] sm:$0xff] }
  0x21   : > { %1508 = vmatpush3.msra.mxu0 %v442_v7  ;;  %1546 = vmatpush3.msra.mxu1 %v676_v13  ;;  %v669_v27 = vld [vmem:[%s2334_s3 + $0x30] sm:$0xff]  ;;  %v429_v28 = vld [vmem:[%s2011_s27 + $0x38] sm:$0xff]  ;;  %v668_v29 = vld [vmem:[%s2334_s3 + $0x28] sm:$0xff] }
  0x22   : > { %1509 = vmatprep.subr.mxu0 %v441_v8  ;;  %1547 = vmatprep.subr.mxu1 %v675_v15  ;;  %v430_v30 = vld [vmem:[%s2011_s27 + $0x40] sm:$0xff]  ;;  %v431_v32 = vld [vmem:[%s2011_s27 + $0x48] sm:$0xff]  ;;  %v432_v33 = vld [vmem:[%s2011_s27 + $0x50] sm:$0xff] }
  0x23   : > { %1510 = vmatpush3.msra.mxu0 %v441_v8  ;;  %1548 = vmatpush3.msra.mxu1 %v675_v15  ;;  %v667_v31 = vld [vmem:[%s2334_s3 + $0x20] sm:$0xff]  ;;  %v433_v34 = vld [vmem:[%s2011_s27 + $0x58] sm:$0xff]  ;;  %v435_v36 = vld [vmem:[%s2011_s27 + $0x68] sm:$0xff] }
  0x24   : > { %1511 = vmatprep.subr.mxu0 %v440_v9  ;;  %1549 = vmatprep.subr.mxu1 %v674_v17  ;;  %v434_v35 = vld [vmem:[%s2011_s27 + $0x60] sm:$0xff]  ;;  %v436_v37 = vld [vmem:[%s2011_s27 + $0x70] sm:$0xff]  ;;  %v437_v38 = vld [vmem:[%s2011_s27 + $0x78] sm:$0xff]  ;;  %s1811_s27 = scalar_lea.vmem %s1244_s12, 16 }
  0x25   : > { %1512 = vmatpush3.msra.mxu0 %v440_v9  ;;  %1550 = vmatpush3.msra.mxu1 %v674_v17  ;;  %v666_v39 = vld [vmem:[%s2334_s3 + $0x18] sm:$0xff]  ;;  %v665_v40 = vld [vmem:[%s2334_s3 + $0x10] sm:$0xff]  ;;  %v664_v41 = vld [vmem:[%s2334_s3 + $0x8] sm:$0xff]  ;;  %p1812_p7 = scmp.ne.s32.totalorder %s1244_s12, %s1811_s27  ;;  %p1819_p11 = scmp.lt.s32.totalorder %s1817_s13, %s1811_s27 }
  0x26   : > { %1513 = vmatprep.subr.mxu0 %v439_v12  ;;  %1551 = vmatprep.subr.mxu1 %v673_v19  ;;  %v663_v42 = vld [vmem:[%s2334_s3] sm:$0xff]  ;;  %v862_v43 = vld [vmem:[%s2336_s5 + $0x78] sm:$0xff]  ;;  %v861_v44 = vld [vmem:[%s2336_s5 + $0x70] sm:$0xff] }
  0x27   : > { %1514 = vmatpush3.msra.mxu0 %v439_v12  ;;  %1552 = vmatpush3.msra.mxu1 %v673_v19  ;;  %v860_v45 = vld [vmem:[%s2336_s5 + $0x68] sm:$0xff]  ;;  %v859_v46 = vld [vmem:[%s2336_s5 + $0x60] sm:$0xff]  ;;  %v858_v47 = vld [vmem:[%s2336_s5 + $0x58] sm:$0xff]  ;;  %p1813_p8 = pnand %p1812_p7, %p2287_p6  ;;  %p1820_p12 = por %p1819_p11, %p1818_p10 }
  0x28   : > { %1515 = vmatprep.subr.mxu0 %v438_v14  ;;  %1553 = vmatprep.subr.mxu1 %v672_v21  ;;  %v857_v48 = vld [vmem:[%s2336_s5 + $0x50] sm:$0xff]  ;;  %v856_v49 = vld [vmem:[%s2336_s5 + $0x48] sm:$0xff]  ;;  %v855_v50 = vld [vmem:[%s2336_s5 + $0x40] sm:$0xff] }
  0x29   : > { %1516 = vmatpush3.msra.mxu0 %v438_v14  ;;  %1554 = vmatpush3.msra.mxu1 %v672_v21  ;;  %v854_v51 = vld [vmem:[%s2336_s5 + $0x38] sm:$0xff]  ;;  %v853_v52 = vld [vmem:[%s2336_s5 + $0x30] sm:$0xff]  ;;  %v852_v53 = vld [vmem:[%s2336_s5 + $0x28] sm:$0xff]  ;;  %p1814_p9 = pneg %p1813_p8 }
  0x2a   : > { %1518 = vmatmul.mubr.msk.f32.vlgmr.msra.gmra.mxu0 %vm453_vm1, %v423_v16  ;;  %1555 = vmatprep.subr.mxu1 %v671_v23  ;;  %v851_v54 = vld [vmem:[%s2336_s5 + $0x20] sm:$0xff]  ;;  %v850_v55 = vld [vmem:[%s2336_s5 + $0x18] sm:$0xff] }
  0x2b   : > { %1520 = vmatprep.mubr.msk.f32.mxu0 %vm453_vm1, %v424_v18  ;;  %1556 = vmatpush3.msra.mxu1 %v671_v23  ;;  %v1351_v56 = vld [vmem:[%s2333_s2] ss:$0 sm:$0xff]  ;;  %p1821_p13 = pnand %p1820_p12, %p1814_p9 }
  0x2c   : > { %1557 = vmatprep.subr.mxu1 %v670_v25  ;;  %1597 = vmatprep.subr.mxu0 %v862_v43 }
  0x2d   : > { %1558 = vmatpush3.msra.mxu1 %v670_v25  ;;  %1598 = vmatpush3.msra.mxu0 %v862_v43  ;;  %v847_v43 = vld [vmem:[%s2336_s5] sm:$0xff] }
  0x2e   : > { %1521 = vmatmul.mubr.msk.f32.gmra.mxu0 %vm453_vm1, %v425_v20  ;;  %1559 = vmatprep.subr.mxu1 %v669_v27 }
  0x2f   : > { %1523 = vmatprep.mubr.msk.f32.mxu0 %vm453_vm1, %v426_v22  ;;  %1560 = vmatpush3.msra.mxu1 %v669_v27 }
  0x30   : > { %1561 = vmatprep.subr.mxu1 %v668_v29  ;;  %1599 = vmatprep.subr.mxu0 %v861_v44 }
  0x31   : > { %1562 = vmatpush3.msra.mxu1 %v668_v29  ;;  %1600 = vmatpush3.msra.mxu0 %v861_v44  ;;  %v1917_v44 = vmov 0.0  }
  0x32   : > { %1524 = vmatmul.mubr.msk.f32.gmra.mxu0 %vm453_vm1, %v427_v24  ;;  %1563 = vmatprep.subr.mxu1 %v667_v31 }
  0x33   : > { %1526 = vmatprep.mubr.msk.f32.mxu0 %vm453_vm1, %v428_v26  ;;  %1564 = vmatpush3.msra.mxu1 %v667_v31 }
  0x34   : > { %1565 = vmatprep.subr.mxu1 %v666_v39  ;;  %1601 = vmatprep.subr.mxu0 %v860_v45 }
  0x35   : > { %1566 = vmatpush3.msra.mxu1 %v666_v39  ;;  %1602 = vmatpush3.msra.mxu0 %v860_v45  ;;  %v1368_v45 = vld [vmem:[%s2335_s4] ss:$0 sm:$0xff] }
  0x36   : > { %1527 = vmatmul.mubr.msk.f32.gmra.mxu0 %vm453_vm1, %v429_v28  ;;  %1567 = vmatprep.subr.mxu1 %v665_v40 }
  0x37   : > { %1529 = vmatprep.mubr.msk.f32.mxu0 %vm453_vm1, %v430_v30  ;;  %1568 = vmatpush3.msra.mxu1 %v665_v40 }
  0x38   : > { %1569 = vmatprep.subr.mxu1 %v664_v41  ;;  %1603 = vmatprep.subr.mxu0 %v859_v46 }
  0x39   : > { %1570 = vmatpush3.msra.mxu1 %v664_v41  ;;  %1604 = vmatpush3.msra.mxu0 %v859_v46  ;;  %v849_v41 = vld [vmem:[%s2336_s5 + $0x10] sm:$0xff] }
  0x3a   : > { %1530 = vmatmul.mubr.msk.f32.gmra.mxu0 %vm453_vm1, %v431_v32  ;;  %1571 = vmatprep.subr.mxu1 %v663_v42 }
  0x3b   : > { %1532 = vmatprep.mubr.msk.f32.mxu0 %vm453_vm1, %v432_v33  ;;  %1572 = vmatpush3.msra.mxu1 %v663_v42  ;;  %v848_v42 = vld [vmem:[%s2336_s5 + $0x8] sm:$0xff] }
  0x3c   : > { %1605 = vmatprep.subr.mxu0 %v858_v47  ;;  %1653 = vmatprep.subr.mxu1 %v1917_v44 }
  0x3d   : > { %1606 = vmatpush3.msra.mxu0 %v858_v47 }
  0x3e   : > { %1533 = vmatmul.mubr.msk.f32.gmra.mxu0 %vm453_vm1, %v433_v34  ;;  %1607 = vmatprep.subr.mxu0 %v857_v48 }
  0x3f   : > { %1535 = vmatprep.mubr.msk.f32.mxu0 %vm453_vm1, %v434_v35  ;;  %1608 = vmatpush3.msra.mxu0 %v857_v48 }
  0x40   : > { %1609 = vmatprep.subr.mxu0 %v856_v49 }
  0x41   : > { %1610 = vmatpush3.msra.mxu0 %v856_v49 }
  0x42   : > { %1536 = vmatmul.mubr.msk.f32.gmra.mxu0 %vm453_vm1, %v435_v36  ;;  %1611 = vmatprep.subr.mxu0 %v855_v50 }
  0x43   : > { %1538 = vmatprep.mubr.msk.f32.mxu0 %vm453_vm1, %v436_v37  ;;  %1612 = vmatpush3.msra.mxu0 %v855_v50 }
  0x44   : > { %1613 = vmatprep.subr.mxu0 %v854_v51 }
  0x45   : > { %1614 = vmatpush3.msra.mxu0 %v854_v51 }
  0x46   : > { %1539 = vmatmul.mubr.msk.f32.gmra.mxu0 %vm453_vm1, %v437_v38  ;;  %1615 = vmatprep.subr.mxu0 %v853_v52 }
  0x47   : > { %1616 = vmatpush3.msra.mxu0 %v853_v52 }
  0x48   : > { %1617 = vmatprep.subr.mxu0 %v852_v53 }
  0x49   : > { %1618 = vmatpush3.msra.mxu0 %v852_v53 }
  0x4a   : > { %1619 = vmatprep.subr.mxu0 %v851_v54 }
  0x4b   : > { %1620 = vmatpush3.msra.mxu0 %v851_v54 }
  0x4c   : > { %1621 = vmatprep.subr.mxu0 %v850_v55 }
  0x4d   : > { %1622 = vmatpush3.msra.mxu0 %v850_v55 }
  0x4e   : > { %1623 = vmatprep.subr.mxu0 %v849_v41 }
  0x4f   : > { %1624 = vmatpush3.msra.mxu0 %v849_v41 }
  0x50   : > { %1625 = vmatprep.subr.mxu0 %v848_v42 }
  0x51   : > { %1626 = vmatpush3.msra.mxu0 %v848_v42 }
  0x52   : > { %1627 = vmatprep.subr.mxu0 %v847_v43 }
  0x53   : > { %1628 = vmatpush3.msra.mxu0 %v847_v43 }
  0x54   : > { %1688 = vmatprep.subr.mxu0 %v1917_v44 }
  0xea   : > { %v1519_v57 = vpop.f32.mrf.mxu0 }
  0xeb   : > { %v574_v58 = vadd.f32 %v1519_v57, %v1351_v56 }
  0xec   : > { %v568_v59 = vpop.f32.mrf.mxu0 }
  0xed   : > { %v569_v60 = vadd.f32 %v1351_v56, %v568_v59  ;;  %v648_v63 = vmax.f32 %v574_v58, 0.0 }
  0xee   : > { %v1522_v61 = vpop.f32.mrf.mxu0 }
  0xef   : > { %v647_v62 = vmax.f32 %v569_v60, 0.0  ;;  %v584_v0 = vadd.f32 %v1522_v61, %v1351_v56 }
  0xf0   : > { %v578_v1 = vpop.f32.mrf.mxu0 }
  0xf1   : > { %v579_v2 = vadd.f32 %v1351_v56, %v578_v1  ;;  %1573 = vmatprep.mubr.f32.mxu1 %v647_v62  ;;  %v650_v5 = vmax.f32 %v584_v0, 0.0 }
  0xf2   : > { %v1525_v3 = vpop.f32.mrf.mxu0  ;;  %1574 = vmatmul.mubr.f32.vlgmr.msra.gmra.mxu1 %v648_v63 }
  0xf3   : > { %v649_v4 = vmax.f32 %v579_v2, 0.0  ;;  %v594_v6 = vadd.f32 %v1525_v3, %v1351_v56 }
  0xf4   : > { %v588_v7 = vpop.f32.mrf.mxu0 }
  0xf5   : > { %v589_v8 = vadd.f32 %v1351_v56, %v588_v7  ;;  %1576 = vmatprep.mubr.f32.mxu1 %v649_v4  ;;  %v652_v11 = vmax.f32 %v594_v6, 0.0 }
  0xf6   : > { %v1528_v9 = vpop.f32.mrf.mxu0  ;;  %1577 = vmatmul.mubr.f32.gmra.mxu1 %v650_v5 }
  0xf7   : > { %v651_v10 = vmax.f32 %v589_v8, 0.0  ;;  %v604_v12 = vadd.f32 %v1528_v9, %v1351_v56 }
  0xf8   : > { %v598_v13 = vpop.f32.mrf.mxu0 }
  0xf9   : > { %v599_v14 = vadd.f32 %v1351_v56, %v598_v13  ;;  %1579 = vmatprep.mubr.f32.mxu1 %v651_v10  ;;  %v654_v17 = vmax.f32 %v604_v12, 0.0 }
  0xfa   : > { %v1531_v15 = vpop.f32.mrf.mxu0  ;;  %1580 = vmatmul.mubr.f32.gmra.mxu1 %v652_v11 }
  0xfb   : > { %v653_v16 = vmax.f32 %v599_v14, 0.0  ;;  %v614_v18 = vadd.f32 %v1531_v15, %v1351_v56 }
  0xfc   : > { %v608_v19 = vpop.f32.mrf.mxu0 }
  0xfd   : > { %v609_v20 = vadd.f32 %v1351_v56, %v608_v19  ;;  %1582 = vmatprep.mubr.f32.mxu1 %v653_v16  ;;  %v656_v23 = vmax.f32 %v614_v18, 0.0 }
  0xfe   : > { %v1534_v21 = vpop.f32.mrf.mxu0  ;;  %1583 = vmatmul.mubr.f32.gmra.mxu1 %v654_v17 }
  0xff   : > { %v655_v22 = vmax.f32 %v609_v20, 0.0  ;;  %v624_v24 = vadd.f32 %v1534_v21, %v1351_v56 }
 0x100   : > { %v618_v25 = vpop.f32.mrf.mxu0 }
 0x101   : > { %v619_v26 = vadd.f32 %v1351_v56, %v618_v25  ;;  %1585 = vmatprep.mubr.f32.mxu1 %v655_v22  ;;  %v658_v29 = vmax.f32 %v624_v24, 0.0 }
 0x102   : > { %v1537_v27 = vpop.f32.mrf.mxu0  ;;  %1586 = vmatmul.mubr.f32.gmra.mxu1 %v656_v23 }
 0x103   : > { %v657_v28 = vmax.f32 %v619_v26, 0.0  ;;  %v634_v30 = vadd.f32 %v1537_v27, %v1351_v56 }
 0x104   : > { %v628_v31 = vpop.f32.mrf.mxu0 }
 0x105   : > { %v629_v32 = vadd.f32 %v1351_v56, %v628_v31  ;;  %1588 = vmatprep.mubr.f32.mxu1 %v657_v28  ;;  %v660_v35 = vmax.f32 %v634_v30, 0.0  ;;  %v1032_v30 = vld [vmem:[#allocation2] sm:$0x1]  ;;  %v1919_v31 = vmov 0  }
 0x106   : > { %v1540_v33 = vpop.f32.mrf.mxu0  ;;  %1589 = vmatmul.mubr.f32.gmra.mxu1 %v658_v29  ;;  %1773 = vset.pattern.permute.xlu0 %v1919_v31 }
 0x107   : > { %v659_v34 = vmax.f32 %v629_v32, 0.0  ;;  %v644_v36 = vadd.f32 %v1540_v33, %v1351_v56  ;;  %1774 = vset.pattern.permute.xlu1 %v1919_v31  ;;  %1035 = vperm.xlu0 %1773, %v1032_v30   ;;  %v1121_v31 = vld [vmem:[#allocation3] sm:$0x1] }
 0x108   : > { %v638_v37 = vpop.f32.mrf.mxu0 }
 0x109   : > { %v639_v38 = vadd.f32 %v1351_v56, %v638_v37  ;;  %1591 = vmatprep.mubr.f32.mxu1 %v659_v34  ;;  %v662_v40 = vmax.f32 %v644_v36, 0.0 }
 0x10a   : > { %1592 = vmatmul.mubr.f32.gmra.mxu1 %v660_v35 }
 0x10b   : > { %v661_v39 = vmax.f32 %v639_v38, 0.0 }
 0x10d   : > { %1594 = vmatprep.mubr.f32.mxu1 %v661_v39 }
 0x10e   : > { %1595 = vmatmul.mubr.f32.gmra.mxu1 %v662_v40 }
 0x10f   : > { %1685 = vmatprep.mubr.msk.f32.mxu1 %vm1918_vm2, %v1917_v44 }
 0x1b2   : > { %v1575_v46 = vpop.f32.mrf.mxu1 }
 0x1b3   : > { %v2174_v47 = vadd.f32 %v1575_v46, %v1368_v45 }
 0x1b4   : > { %v752_v48 = vpop.f32.mrf.mxu1 }
 0x1b5   : > { %v2176_v49 = vadd.f32 %v1368_v45, %v752_v48  ;;  %v832_v52 = vmax.f32 %v2174_v47, 0.0  ;;  %v2238_v47 = vld [vmem:[%s2337_s6] ss:$0 sm:$0xff] }
 0x1b6   : > { %v1578_v50 = vpop.f32.mrf.mxu1 }
 0x1b7   : > { %v831_v51 = vmax.f32 %v2176_v49, 0.0  ;;  %v2180_v53 = vadd.f32 %v1578_v50, %v1368_v45 }
 0x1b8   : > { %v762_v54 = vpop.f32.mrf.mxu1 }
 0x1b9   : > { %v2182_v55 = vadd.f32 %v1368_v45, %v762_v54  ;;  %1629 = vmatprep.mubr.f32.mxu0 %v831_v51  ;;  %v834_v58 = vmax.f32 %v2180_v53, 0.0 }
 0x1ba   : > { %v1581_v56 = vpop.f32.mrf.mxu1  ;;  %1630 = vmatmul.mubr.f32.vlgmr.msra.gmra.mxu0 %v832_v52 }
 0x1bb   : > { %v833_v57 = vmax.f32 %v2182_v55, 0.0  ;;  %v2190_v59 = vadd.f32 %v1581_v56, %v1368_v45 }
 0x1bc   : > { %v772_v60 = vpop.f32.mrf.mxu1 }
 0x1bd   : > { %v2192_v61 = vadd.f32 %v1368_v45, %v772_v60  ;;  %1632 = vmatprep.mubr.f32.mxu0 %v833_v57  ;;  %v836_v0 = vmax.f32 %v2190_v59, 0.0 }
 0x1be   : > { %v1584_v62 = vpop.f32.mrf.mxu1  ;;  %1633 = vmatmul.mubr.f32.gmra.mxu0 %v834_v58 }
 0x1bf   : > { %v835_v63 = vmax.f32 %v2192_v61, 0.0  ;;  %v788_v1 = vadd.f32 %v1584_v62, %v1368_v45 }
 0x1c0   : > { %v782_v2 = vpop.f32.mrf.mxu1 }
 0x1c1   : > { %v783_v3 = vadd.f32 %v1368_v45, %v782_v2  ;;  %1635 = vmatprep.mubr.f32.mxu0 %v835_v63  ;;  %v838_v6 = vmax.f32 %v788_v1, 0.0 }
 0x1c2   : > { %v1587_v4 = vpop.f32.mrf.mxu1  ;;  %1636 = vmatmul.mubr.f32.gmra.mxu0 %v836_v0 }
 0x1c3   : > { %v837_v5 = vmax.f32 %v783_v3, 0.0  ;;  %v798_v7 = vadd.f32 %v1587_v4, %v1368_v45 }
 0x1c4   : > { %v792_v8 = vpop.f32.mrf.mxu1 }
 0x1c5   : > { %v793_v9 = vadd.f32 %v1368_v45, %v792_v8  ;;  %1638 = vmatprep.mubr.f32.mxu0 %v837_v5  ;;  %v840_v12 = vmax.f32 %v798_v7, 0.0 }
 0x1c6   : > { %v1590_v10 = vpop.f32.mrf.mxu1  ;;  %1639 = vmatmul.mubr.f32.gmra.mxu0 %v838_v6 }
 0x1c7   : > { %v839_v11 = vmax.f32 %v793_v9, 0.0  ;;  %v808_v13 = vadd.f32 %v1590_v10, %v1368_v45 }
 0x1c8   : > { %v802_v14 = vpop.f32.mrf.mxu1 }
 0x1c9   : > { %v803_v15 = vadd.f32 %v1368_v45, %v802_v14  ;;  %1641 = vmatprep.mubr.f32.mxu0 %v839_v11  ;;  %v842_v18 = vmax.f32 %v808_v13, 0.0 }
 0x1ca   : > { %v1593_v16 = vpop.f32.mrf.mxu1  ;;  %1642 = vmatmul.mubr.f32.gmra.mxu0 %v840_v12 }
 0x1cb   : > { %v841_v17 = vmax.f32 %v803_v15, 0.0  ;;  %v818_v19 = vadd.f32 %v1593_v16, %v1368_v45 }
 0x1cc   : > { %v812_v20 = vpop.f32.mrf.mxu1 }
 0x1cd   : > { %v813_v21 = vadd.f32 %v1368_v45, %v812_v20  ;;  %1644 = vmatprep.mubr.f32.mxu0 %v841_v17  ;;  %v844_v25 = vmax.f32 %v818_v19, 0.0  ;;  %v1038_v19 = vlaneseq }
 0x1ce   : > { %v1596_v22 = vpop.f32.mrf.mxu1  ;;  %1645 = vmatmul.mubr.f32.gmra.mxu0 %v842_v18 }
 0x1cf   : > { %v843_v23 = vmax.f32 %v813_v21, 0.0  ;;  %v828_v24 = vadd.f32 %v1596_v22, %v1368_v45  ;;  %v1039_v20 = vshrl.u32 %v1038_v19, 7  ;;  %v1113_v21 = vand.u32 127, %v1038_v19 }
 0x1d0   : > { %v822_v26 = vpop.f32.mrf.mxu1 }
 0x1d1   : > { %v846_v27 = vmax.f32 %v828_v24, 0.0  ;;  %v823_v28 = vadd.f32 %v1368_v45, %v822_v26  ;;  %1647 = vmatprep.mubr.f32.mxu0 %v843_v23  ;;  %v2278_v22 = vsub.s32 0, %v1039_v20  ;;  %v1036_v24 = vpop.permute.xlu0 %1035 }
 0x1d2   : > { %1648 = vmatmul.mubr.f32.gmra.mxu0 %v844_v25 }
 0x1d3   : > { %v845_v29 = vmax.f32 %v823_v28, 0.0  ;;  %1689 = vmatpush3.msra.mxu0 %v846_v27  ;;  %v1041_v26 = vrot.slane %v1036_v24, %v2278_v22 }
 0x1d4   : > { %1690 = vmatprep.subr.mxu0 %v1917_v44 }
 0x1d5   : > { %1650 = vmatprep.mubr.f32.mxu0 %v845_v29  ;;  %1691 = vmatpush3.msra.mxu0 %v845_v29 }
 0x1d6   : > { %1651 = vmatmul.mubr.f32.gmra.mxu0 %v846_v27  ;;  %1692 = vmatprep.subr.mxu0 %v1917_v44 }
 0x1d7   : > { %1693 = vmatpush3.msra.mxu0 %v844_v25  ;;  %1720 = vmatprep.mubr.msk.f32.mxu0 %vm1918_vm2, %v1917_v44 }
 0x1d8   : > { %1694 = vmatprep.subr.mxu0 %v1917_v44 }
 0x1d9   : > { %1695 = vmatpush3.msra.mxu0 %v843_v23  ;;  %v1117_v23 = vstv %s1370_s29 }
 0x1da   : > { %1696 = vmatprep.subr.mxu0 %v1917_v44  ;;  %v1118_v25 = vadd.s32 %v1117_v23, %v1113_v21 }
 0x1db   : > { %1697 = vmatpush3.msra.mxu0 %v842_v18  ;;  %v1031_v18 = vld [vmem:[%s2338_s7] sm:$0x1] }
 0x1dc   : > { %1698 = vmatprep.subr.mxu0 %v1917_v44  ;;  %vm1119_vm3 = vcmp.lt.s32.totalorder %v1118_v25, 200 }
 0x1dd   : > { %1699 = vmatpush3.msra.mxu0 %v841_v17 }
 0x1de   : > { %1700 = vmatprep.subr.mxu0 %v1917_v44 }
 0x1df   : > { %1701 = vmatpush3.msra.mxu0 %v840_v12 }
 0x1e0   : > { %1702 = vmatprep.subr.mxu0 %v1917_v44 }
 0x1e1   : > { %1703 = vmatpush3.msra.mxu0 %v839_v11 }
 0x1e2   : > { %1704 = vmatprep.subr.mxu0 %v1917_v44 }
 0x1e3   : > { %1705 = vmatpush3.msra.mxu0 %v838_v6 }
 0x1e4   : > { %1706 = vmatprep.subr.mxu0 %v1917_v44 }
 0x1e5   : > { %1707 = vmatpush3.msra.mxu0 %v837_v5 }
 0x1e6   : > { %1708 = vmatprep.subr.mxu0 %v1917_v44 }
 0x1e7   : > { %1709 = vmatpush3.msra.mxu0 %v836_v0 }
 0x1e8   : > { %1710 = vmatprep.subr.mxu0 %v1917_v44 }
 0x1e9   : > { %1711 = vmatpush3.msra.mxu0 %v835_v63 }
 0x1ea   : > { %1712 = vmatprep.subr.mxu0 %v1917_v44 }
 0x1eb   : > { %1713 = vmatpush3.msra.mxu0 %v834_v58 }
 0x1ec   : > { %1714 = vmatprep.subr.mxu0 %v1917_v44 }
 0x1ed   : > { %1715 = vmatpush3.msra.mxu0 %v833_v57 }
 0x1ee   : > { %1716 = vmatprep.subr.mxu0 %v1917_v44 }
 0x1ef   : > { %1717 = vmatpush3.msra.mxu0 %v832_v52 }
 0x1f0   : > { %1718 = vmatprep.subr.mxu0 %v1917_v44 }
 0x1f1   : > { %1719 = vmatpush3.msra.mxu0 %v831_v51 }
 0x27a   : > { %v2229_v32 = vpop.f32.mrf.mxu0 }
 0x27b   : > { %v942_v10 = vadd.f32 %v2229_v32, %v2238_v47 }
 0x27c   : > { %v2231_v33 = vpop.f32.mrf.mxu0 }
 0x27d   : > { %v937_v12 = vadd.f32 %v2238_v47, %v2231_v33 }
 0x27e   : > { %v1634_v34 = vpop.f32.mrf.mxu0 }
 0x27f   : > { %v952_v6 = vadd.f32 %v1634_v34, %v2238_v47 }
 0x280   : > { %v2233_v35 = vpop.f32.mrf.mxu0 }
 0x281   : > { %v947_v8 = vadd.f32 %v2238_v47, %v2233_v35 }
 0x282   : > { %v1637_v36 = vpop.f32.mrf.mxu0 }
 0x283   : > { %v962_v2 = vadd.f32 %v1637_v36, %v2238_v47 }
 0x284   : > { %v956_v37 = vpop.f32.mrf.mxu0 }
 0x285   : > { %v957_v4 = vadd.f32 %v2238_v47, %v956_v37 }
 0x286   : > { %v1640_v38 = vpop.f32.mrf.mxu0 }
 0x287   : > { %v972_v62 = vadd.f32 %v1640_v38, %v2238_v47 }
 0x288   : > { %v966_v39 = vpop.f32.mrf.mxu0 }
 0x289   : > { %v967_v0 = vadd.f32 %v2238_v47, %v966_v39 }
 0x28a   : > { %v1643_v40 = vpop.f32.mrf.mxu0 }
 0x28b   : > { %v982_v58 = vadd.f32 %v1643_v40, %v2238_v47 }
 0x28c   : > { %v976_v41 = vpop.f32.mrf.mxu0 }
 0x28d   : > { %v977_v60 = vadd.f32 %v2238_v47, %v976_v41 }
 0x28e   : > { %v1646_v42 = vpop.f32.mrf.mxu0 }
 0x28f   : > { %v992_v54 = vadd.f32 %v1646_v42, %v2238_v47 }
 0x290   : > { %v986_v43 = vpop.f32.mrf.mxu0 }
 0x291   : > { %v987_v56 = vadd.f32 %v2238_v47, %v986_v43 }
 0x292   : > { %v1649_v45 = vpop.f32.mrf.mxu0 }
 0x293   : > { %v1002_v52 = vadd.f32 %v1649_v45, %v2238_v47 }
 0x294   : > { %v996_v46 = vpop.f32.mrf.mxu0 }
 0x295   : > { %v997_v53 = vadd.f32 %v2238_v47, %v996_v46 }
 0x296   : > { %v1652_v48 = vpop.f32.mrf.mxu0 }
 0x297   : > { %v1012_v49 = vadd.f32 %v1652_v48, %v2238_v47 }
 0x298   : > { %v1006_v50 = vpop.f32.mrf.mxu0 }
 0x299   : > { %1775 = vtanh.f32 %v1012_v49  ;;  %v1007_v51 = vadd.f32 %v2238_v47, %v1006_v50 }
 0x29b   : > { %1777 = vtanh.f32 %v1007_v51 }
 0x29c   : > { %1779 = vtanh.f32 %v1002_v52 }
 0x29d   : > { %1781 = vtanh.f32 %v997_v53 }
 0x29e   : > { %1783 = vtanh.f32 %v992_v54 }
 0x29f   : > { %1785 = vtanh.f32 %v987_v56 }
 0x2a0   : > { %1787 = vtanh.f32 %v982_v58 }
 0x2a1   : > { %1789 = vtanh.f32 %v977_v60 }
 0x2a2   : > { %1791 = vtanh.f32 %v972_v62 }
 0x2a3   : > { %1793 = vtanh.f32 %v967_v0 }
 0x2a4   : > { %1795 = vtanh.f32 %v962_v2 }
 0x2a5   : > { %1797 = vtanh.f32 %v957_v4 }
 0x2a6   : > { %v1776_v55 = vpop.eup %1775  ;;  %1799 = vtanh.f32 %v952_v6 }
 0x2a7   : > { %1654 = vmatpush3.xpose.msra.mxu1 %v1776_v55  ;;  %1801 = vtanh.f32 %v947_v8 }
 0x2a8   : > { %1655 = vmatprep.subr.mxu1 %v1917_v44  ;;  %v1778_v57 = vpop.eup %1777  ;;  %1803 = vtanh.f32 %v942_v10 }
 0x2a9   : > { %v1780_v59 = vpop.eup %1779  ;;  %1805 = vtanh.f32 %v937_v12 }
 0x2aa   : > { %v1782_v61 = vpop.eup %1781 }
 0x2ab   : > { %1656 = vmatpush3.xpose.msra.mxu1 %v1778_v57  ;;  %v1784_v63 = vpop.eup %1783 }
 0x2ac   : > { %1657 = vmatprep.subr.mxu1 %v1917_v44  ;;  %v1786_v1 = vpop.eup %1785 }
 0x2ad   : > { %v1788_v3 = vpop.eup %1787 }
 0x2ae   : > { %v1790_v5 = vpop.eup %1789 }
 0x2af   : > { %1658 = vmatpush3.xpose.msra.mxu1 %v1780_v59  ;;  %v1792_v7 = vpop.eup %1791 }
 0x2b0   : > { %1659 = vmatprep.subr.mxu1 %v1917_v44  ;;  %v1794_v9 = vpop.eup %1793 }
 0x2b1   : > { %v1796_v11 = vpop.eup %1795 }
 0x2b2   : > { %v1798_v13 = vpop.eup %1797 }
 0x2b3   : > { %1660 = vmatpush3.xpose.msra.mxu1 %v1782_v61  ;;  %v1800_v14 = vpop.eup %1799 }
 0x2b4   : > { %1661 = vmatprep.subr.mxu1 %v1917_v44  ;;  %v1802_v15 = vpop.eup %1801 }
 0x2b5   : > { %v1804_v16 = vpop.eup %1803 }
 0x2b6   : > { %v1806_v17 = vpop.eup %1805 }
 0x2b7   : > { %1662 = vmatpush3.xpose.msra.mxu1 %v1784_v63 }
 0x2b8   : > { %1663 = vmatprep.subr.mxu1 %v1917_v44 }
 0x2bb   : > { %1664 = vmatpush3.xpose.msra.mxu1 %v1786_v1 }
 0x2bc   : > { %1665 = vmatprep.subr.mxu1 %v1917_v44 }
 0x2bf   : > { %1666 = vmatpush3.xpose.msra.mxu1 %v1788_v3 }
 0x2c0   : > { %1667 = vmatprep.subr.mxu1 %v1917_v44 }
 0x2c3   : > { %1668 = vmatpush3.xpose.msra.mxu1 %v1790_v5 }
 0x2c4   : > { %1669 = vmatprep.subr.mxu1 %v1917_v44 }
 0x2c7   : > { %1670 = vmatpush3.xpose.msra.mxu1 %v1792_v7 }
 0x2c8   : > { %1671 = vmatprep.subr.mxu1 %v1917_v44 }
 0x2cb   : > { %1672 = vmatpush3.xpose.msra.mxu1 %v1794_v9 }
 0x2cc   : > { %1673 = vmatprep.subr.mxu1 %v1917_v44 }
 0x2cf   : > { %1674 = vmatpush3.xpose.msra.mxu1 %v1796_v11 }
 0x2d0   : > { %1675 = vmatprep.subr.mxu1 %v1917_v44 }
 0x2d3   : > { %1676 = vmatpush3.xpose.msra.mxu1 %v1798_v13 }
 0x2d4   : > { %1677 = vmatprep.subr.mxu1 %v1917_v44 }
 0x2d7   : > { %1678 = vmatpush3.xpose.msra.mxu1 %v1800_v14 }
 0x2d8   : > { %1679 = vmatprep.subr.mxu1 %v1917_v44 }
 0x2db   : > { %1680 = vmatpush3.xpose.msra.mxu1 %v1802_v15 }
 0x2dc   : > { %1681 = vmatprep.subr.mxu1 %v1917_v44 }
 0x2df   : > { %1682 = vmatpush3.xpose.msra.mxu1 %v1804_v16 }
 0x2e0   : > { %1683 = vmatprep.subr.mxu1 %v1917_v44 }
 0x2e3   : > { %1684 = vmatpush3.xpose.msra.mxu1 %v1806_v17 }
 0x2e6   : > { %1686 = vmatmul.mubr.f32.vlgmr.msra.gmra.mxu1 %v1031_v18 }
 0x3a6   : > { %v1108_v27 = vpop.f32.mrf.mxu1 }
 0x3a7   : > { %v1109_v44 = vadd.f32 %v1108_v27, %v1041_v26 }
 0x3a8   : > { %v1687_v28 = vpop.f32.mrf.mxu1 }
 0x3a9   : > { %v1120_v29 = vsel %vm1119_vm3, %v1109_v44, -1e+30 }
 0x3aa   : > { %v1123_v30 = vsel %vm1122_vm4, %v1120_v29, -inf }
 0x3ab   : > { %1124 = vmax.xlane.f32.xlu0 %v1123_v30 }
 0x434   : > { %v1125_v32 = vpop.xlane.xlu0 %1124 }
 0x435   : > { %v1126_v33 = vmax.f32 %v1121_v31, %v1125_v32 }
 0x437   : > { %v1127_v34 = vsub.f32 %v1121_v31, %v1126_v33  ;;  %1132 = vperm.xlu1 %1774, %v1126_v33   ;;  %1233 = vst.msk [vmem:[#allocation3] sm:$0x1] %vm1148_vm5, %v1126_v33 }
 0x439   : > { %v1128_v35 = vmul.f32 1.442695, %v1127_v34 }
 0x43b   : > { %1807 = vpow2.f32 %v1128_v35 }
 0x448   : > { %v1808_v36 = vpop.eup %1807 }
 0x449   : > { %1153 = vperm.xlu0 %1773, %v1808_v36  }
 0x4b2   : > { %v1133_v37 = vpop.permute.xlu1 %1132 }
 0x4b3   : > { %v1138_v38 = vrot.slane %v1133_v37, %v2278_v22 }
 0x4b5   : > { %v1139_v39 = vsub.f32 %v1120_v29, %v1138_v38 }
 0x4b7   : > { %v1140_v40 = vmul.f32 1.442695, %v1139_v39 }
 0x4b9   : > { %1809 = vpow2.f32 %v1140_v40 }
 0x4c6   : > { %v1810_v41 = vpop.eup %1809 }
 0x4c7   : > { %1721 = vmatmul.mubr.f32.vlgmr.msra.gmra.mxu0 %v1810_v41  ;;  %v1144_v42 = vsel %vm1122_vm4, %v1810_v41, 0.0 }
 0x4c8   : > { %1145 = vadd.xlane.f32.xlu1 %v1144_v42 }
 0x4c9   : > { %1824 = shalt.err (!%p1821_p13)
}
 0x4ca   : > { %1724 = dma.vmem_to_hbm [thread:$0]  (%p2287_p6), %s1244_s12, 16, %s2340_s9, [#allocation4]   ;;  %v1142_v43 = vld [vmem:[#allocation5] sm:$0x1] }
 0x4cb   : > { %s1921_s15 = smov [#allocation5]   ;;  %v1143_v45 = vmul.f32 %v1808_v36, %v1142_v43 }
 0x4cc   : > { %s1256_s16 = sshll.u32 %s1921_s15, 4  ;;  %s1257_s16 = int_to_ptr.vmem [resolvable:$true] %s1256_s16 }
 0x4cd   : > { %s1835_s17 = scalar_lea.vmem %s1257_s16, 16  ;;  %s1841_s18 = scalar_lea.vmem %s1257_s16, 32 }
 0x4ce   : > { %p1836_p0 = scmp.ne.s32.totalorder %s1257_s16, %s1835_s17  ;;  %p1842_p3 = scmp.lt.s32.totalorder %s1257_s16, %s1257_s16 }
 0x4cf   : > { %p1843_p4 = scmp.lt.s32.totalorder %s1841_s18, %s1835_s17 }
 0x4d0   : > { %p1837_p1 = pnand %p1836_p0, %p2287_p6 }
 0x4d1   : > { %p1844_p5 = por %p1843_p4, %p1842_p3 }
 0x4d2   : > { %p1838_p2 = pneg %p1837_p1 }
 0x4d4   : > { %p1845_p7 = pnand %p1844_p5, %p1838_p2 }
 0x551   : > { %v1146_v46 = vpop.xlane.xlu1 %1145 }
 0x552   : > { %v1147_v47 = vadd.f32 %v1146_v46, %v1143_v45 }
 0x554   : > { %1149 = vst.msk [vmem:[#allocation5] sm:$0x1] %vm1148_vm5, %v1147_v47 }
 0x555   : > { %1848 = shalt.err (!%p1845_p7)
}
 0x556   : > { %1726 = dma.vmem_to_hbm [thread:$0]  (%p2287_p6), %s1257_s16, 16, %s2341_s10, [#allocation6]   ;;  %v1154_v48 = vpop.permute.xlu0 %1153  ;;  %v1150_v50 = vld [vmem:[#allocation7] sm:$0x1] }
 0x557   : > { %v1159_v49 = vrot.slane %v1154_v48, %v2278_v22  ;;  %s1922_s25 = smov [#allocation7]  }
 0x558   : > { %s1269_s26 = sshll.u32 %s1922_s25, 4  ;;  %s1270_s26 = int_to_ptr.vmem [resolvable:$true] %s1269_s26 }
 0x559   : > { %v1160_v51 = vmul.f32 %v1159_v49, %v1150_v50  ;;  %s1859_s28 = scalar_lea.vmem %s1270_s26, 16  ;;  %s1865_s29 = scalar_lea.vmem %s1270_s26, 32 }
 0x55a   : > { %p1860_p8 = scmp.ne.s32.totalorder %s1270_s26, %s1859_s28  ;;  %p1866_p11 = scmp.lt.s32.totalorder %s1270_s26, %s1270_s26 }
 0x55b   : > { %p1867_p12 = scmp.lt.s32.totalorder %s1865_s29, %s1859_s28 }
 0x55c   : > { %p1861_p9 = pnand %p1860_p8, %p2287_p6 }
 0x55d   : > { %p1868_p13 = por %p1867_p12, %p1866_p11 }
 0x55e   : > { %p1862_p10 = pneg %p1861_p9 }
 0x560   : > { %p1869_p0 = pnand %p1868_p13, %p1862_p10 }
 0x587   : > { %v1227_v52 = vpop.f32.mrf.mxu0 }
 0x588   : > { %v1231_v53 = vadd.f32 %v1227_v52, %v1160_v51 }
 0x589   : > { %v1722_v54 = vpop.f32.mrf.mxu0 }
 0x58a   : > { %1232 = vst [vmem:[#allocation7] sm:$0x1] %v1231_v53 }
 0x58b   : > { %1872 = shalt.err (!%p1869_p0)
}
 0x58c   : > { %1728 = dma.vmem_to_hbm [thread:$0]  (%p2287_p6), %s1270_s26, 16, %s2342_s11, [#allocation6]  }
 0x58d   : > { %1896 = dma.done.wait (%p2287_p6), [#allocation4], 16  }
 0x58e   : > { %1898 = vsyncadd (%p2287_p6), [#allocation4], 4294967280 }
 0x58f   : > { %1900 = dma.done.wait (%p2287_p6), [#allocation6], 32  }
 0x590   : > { %1902 = vsyncadd (%p2287_p6), [#allocation6], 4294967264 }
 0x591 PF: > { %s26_s21 = sadd.s32 1, %s1913_s21   ;;  %s2344_s19 = smov %s1909_s20 }
 0x592   : > { %p23_p1 = scmp.ge.s32.totalorder %s26_s21, 4   ;;  %s2345_s20 = smov %s2347_s22 }
 0x594   :  { %25 = sbr.rel (!%p23_p1) target bundleno = 6 (0x6), region = 106 }
 0x599   :  { %1290 = vsyncpa [#allocation4], 1 }
 0x59a   :  { %1292 = vsyncpa [#allocation4 + $0x1], 1 }
 0x59b   :  { %1293 = vsyncpa [#allocation6], 1 }

</bundles_post_ra>
